<compile_context>
chip_gen: v6e
topology: v6e:2x2x1
jax: 0.10.0
libtpu: 0.0.40
codegen_flags: <defaults>
</compile_context>

<pallas_src>
import numpy as np
import jax
import jax.numpy as jnp
from jax.experimental import pallas as pl
from jax.experimental.pallas import tpu as pltpu


def _chain_kernel(xs_ref, o_ref):
    # xs_ref: (3, 3, 3) VMEM ref holding [x1, x2, inp] stacked on axis 0.
    x1 = xs_ref[0].astype(jnp.float32)
    x2 = xs_ref[1].astype(jnp.float32)
    inp = xs_ref[2].astype(jnp.float32)

    # ---- v2 rows:  v2[m, :] = (x1.T @ inp)[m, :] + x1[m, :]
    #              = sum_k x1[k, m] * inp[k, :]  +  x1[m, :]
    # Each row stays a (1, 3) value; v1/v2 are never materialized as (3, 3).
    v2_rows = []
    for m in range(3):
        r = x1[m:m + 1, :]
        for k in range(3):
            r = r + x1[k:k + 1, m:m + 1] * inp[k:k + 1, :]   # (1,1)*(1,3)
        v2_rows.append(r)

    # ---- v3 = x2 @ v2 = sum_m  x2[:, m]  (outer)  v2[m, :]
    v3 = x2[:, 0:1] * v2_rows[0]                              # (3,1)*(1,3)
    for m in range(1, 3):
        v3 = v3 + x2[:, m:m + 1] * v2_rows[m]

    # ---- out = x1 @ (v3.T @ v3) = sum_k (x1 @ v3[k, :]^T) (outer) v3[k, :]
    out = None
    for k in range(3):
        c_k = x1[:, 0:1] * v3[k:k + 1, 0:1]                   # (3,1)*(1,1)
        for m in range(1, 3):
            c_k = c_k + x1[:, m:m + 1] * v3[k:k + 1, m:m + 1]
        term = c_k * v3[k:k + 1, :]                           # (3,1)*(1,3)
        out = term if out is None else out + term

    o_ref[...] = out.astype(o_ref.dtype)


@jax.jit
def model_forward(x1, x2, inp):
    """Equivalent of Model.forward(x1, x2, inp) for 3x3 inputs."""
    m = x1.shape[0]
    assert x1.shape == (m, m) and x2.shape == (m, m) and inp.shape == (m, m)
    assert m == 3  # kernel is fully unrolled for the module's 3x3 case

    # Single stacked operand -> one input DMA.  No host-side converts; the
    # kernel casts to f32 (a no-op when the inputs are already f32).
    xs = jnp.stack([x1, x2, inp], axis=0)  # (3, 3, 3)

    vmem = pl.BlockSpec(memory_space=pltpu.MemorySpace.VMEM)

    # Honest cost: 4 matmuls + 1 elementwise add, 3 inputs + 1 output in f32.
    flops = 4 * 2 * m * m * m + m * m
    bytes_accessed = (3 * m * m + m * m) * 4

    return pl.pallas_call(
        _chain_kernel,
        out_shape=jax.ShapeDtypeStruct((m, m), jnp.float32),
        in_specs=[vmem],
        out_specs=vmem,
        cost_estimate=pl.CostEstimate(
            flops=flops, transcendentals=0, bytes_accessed=bytes_accessed),
    )(xs)


if __name__ == "__main__":
    key = jax.random.PRNGKey(0)
    k1, k2, k3 = jax.random.split(key, 3)
    # Same shapes as the PyTorch module's globals: 3x3 matrices.
    x1 = jax.random.normal(k1, (3, 3), dtype=jnp.float32)
    x2 = jax.random.normal(k2, (3, 3), dtype=jnp.float32)
    inp = jax.random.normal(k3, (3, 3), dtype=jnp.float32)

    out = model_forward(x1, x2, inp)
    jax.block_until_ready(out)

    # Reference computed on host in float64 (avoids TPU default-matmul-precision
    # ambiguity in the check).
    x1n, x2n, inpn = (np.asarray(a, dtype=np.float64) for a in (x1, x2, inp))
    v1 = x1n.T @ inpn
    v2 = v1 + x1n
    v3 = x2n @ v2
    v4 = v3.T @ v3
    ref = x1n @ v4

    assert out.shape == (3, 3), out.shape
    assert np.allclose(np.asarray(out, dtype=np.float64), ref,
                       rtol=1e-4, atol=1e-4), (out, ref)

    print("KERNEL_OK")
</pallas_src>

<mosaic_0001>
module attributes {stable_mosaic.version = 11 : i64} {
  func.func @_chain_kernel(%arg0: memref<3x3x3xf32, #tpu.memory_space<vmem>>, %arg1: memref<3x3xf32, #tpu.memory_space<vmem>>) attributes {dimension_semantics = [], scalar_prefetch = 0 : i64, scratch_operands = 0 : i64, tpu.core_type = #tpu.core_type<tc>} {
    %c0 = arith.constant 0 : index
    %c0_0 = arith.constant 0 : index
    %c0_1 = arith.constant 0 : index
    %0 = vector.load %arg0[%c0, %c0_0, %c0_1] : memref<3x3x3xf32, #tpu.memory_space<vmem>>, vector<1x3x3xf32>
    %1 = vector.shape_cast %0 : vector<1x3x3xf32> to vector<3x3xf32>
    %c1 = arith.constant 1 : index
    %c0_2 = arith.constant 0 : index
    %c0_3 = arith.constant 0 : index
    %2 = vector.load %arg0[%c1, %c0_2, %c0_3] : memref<3x3x3xf32, #tpu.memory_space<vmem>>, vector<1x3x3xf32>
    %3 = vector.shape_cast %2 : vector<1x3x3xf32> to vector<3x3xf32>
    %c2 = arith.constant 2 : index
    %c0_4 = arith.constant 0 : index
    %c0_5 = arith.constant 0 : index
    %4 = vector.load %arg0[%c2, %c0_4, %c0_5] : memref<3x3x3xf32, #tpu.memory_space<vmem>>, vector<1x3x3xf32>
    %5 = vector.shape_cast %4 : vector<1x3x3xf32> to vector<3x3xf32>
    %6 = vector.extract_strided_slice %1 {offsets = [0, 0], sizes = [1, 3], strides = [1, 1]} : vector<3x3xf32> to vector<1x3xf32>
    %7 = vector.extract_strided_slice %1 {offsets = [0, 0], sizes = [1, 1], strides = [1, 1]} : vector<3x3xf32> to vector<1x1xf32>
    %8 = vector.extract_strided_slice %5 {offsets = [0, 0], sizes = [1, 3], strides = [1, 1]} : vector<3x3xf32> to vector<1x3xf32>
    %9 = vector.broadcast %7 : vector<1x1xf32> to vector<1x3xf32>
    %10 = arith.mulf %9, %8 : vector<1x3xf32>
    %11 = arith.addf %6, %10 : vector<1x3xf32>
    %12 = vector.extract_strided_slice %1 {offsets = [1, 0], sizes = [1, 1], strides = [1, 1]} : vector<3x3xf32> to vector<1x1xf32>
    %13 = vector.extract_strided_slice %5 {offsets = [1, 0], sizes = [1, 3], strides = [1, 1]} : vector<3x3xf32> to vector<1x3xf32>
    %14 = vector.broadcast %12 : vector<1x1xf32> to vector<1x3xf32>
    %15 = arith.mulf %14, %13 : vector<1x3xf32>
    %16 = arith.addf %11, %15 : vector<1x3xf32>
    %17 = vector.extract_strided_slice %1 {offsets = [2, 0], sizes = [1, 1], strides = [1, 1]} : vector<3x3xf32> to vector<1x1xf32>
    %18 = vector.extract_strided_slice %5 {offsets = [2, 0], sizes = [1, 3], strides = [1, 1]} : vector<3x3xf32> to vector<1x3xf32>
    %19 = vector.broadcast %17 : vector<1x1xf32> to vector<1x3xf32>
    %20 = arith.mulf %19, %18 : vector<1x3xf32>
    %21 = arith.addf %16, %20 : vector<1x3xf32>
    %22 = vector.extract_strided_slice %1 {offsets = [1, 0], sizes = [1, 3], strides = [1, 1]} : vector<3x3xf32> to vector<1x3xf32>
    %23 = vector.extract_strided_slice %1 {offsets = [0, 1], sizes = [1, 1], strides = [1, 1]} : vector<3x3xf32> to vector<1x1xf32>
    %24 = vector.extract_strided_slice %5 {offsets = [0, 0], sizes = [1, 3], strides = [1, 1]} : vector<3x3xf32> to vector<1x3xf32>
    %25 = vector.broadcast %23 : vector<1x1xf32> to vector<1x3xf32>
    %26 = arith.mulf %25, %24 : vector<1x3xf32>
    %27 = arith.addf %22, %26 : vector<1x3xf32>
    %28 = vector.extract_strided_slice %1 {offsets = [1, 1], sizes = [1, 1], strides = [1, 1]} : vector<3x3xf32> to vector<1x1xf32>
    %29 = vector.extract_strided_slice %5 {offsets = [1, 0], sizes = [1, 3], strides = [1, 1]} : vector<3x3xf32> to vector<1x3xf32>
    %30 = vector.broadcast %28 : vector<1x1xf32> to vector<1x3xf32>
    %31 = arith.mulf %30, %29 : vector<1x3xf32>
    %32 = arith.addf %27, %31 : vector<1x3xf32>
    %33 = vector.extract_strided_slice %1 {offsets = [2, 1], sizes = [1, 1], strides = [1, 1]} : vector<3x3xf32> to vector<1x1xf32>
    %34 = vector.extract_strided_slice %5 {offsets = [2, 0], sizes = [1, 3], strides = [1, 1]} : vector<3x3xf32> to vector<1x3xf32>
    %35 = vector.broadcast %33 : vector<1x1xf32> to vector<1x3xf32>
    %36 = arith.mulf %35, %34 : vector<1x3xf32>
    %37 = arith.addf %32, %36 : vector<1x3xf32>
    %38 = vector.extract_strided_slice %1 {offsets = [2, 0], sizes = [1, 3], strides = [1, 1]} : vector<3x3xf32> to vector<1x3xf32>
    %39 = vector.extract_strided_slice %1 {offsets = [0, 2], sizes = [1, 1], strides = [1, 1]} : vector<3x3xf32> to vector<1x1xf32>
    %40 = vector.extract_strided_slice %5 {offsets = [0, 0], sizes = [1, 3], strides = [1, 1]} : vector<3x3xf32> to vector<1x3xf32>
    %41 = vector.broadcast %39 : vector<1x1xf32> to vector<1x3xf32>
    %42 = arith.mulf %41, %40 : vector<1x3xf32>
    %43 = arith.addf %38, %42 : vector<1x3xf32>
    %44 = vector.extract_strided_slice %1 {offsets = [1, 2], sizes = [1, 1], strides = [1, 1]} : vector<3x3xf32> to vector<1x1xf32>
    %45 = vector.extract_strided_slice %5 {offsets = [1, 0], sizes = [1, 3], strides = [1, 1]} : vector<3x3xf32> to vector<1x3xf32>
    %46 = vector.broadcast %44 : vector<1x1xf32> to vector<1x3xf32>
    %47 = arith.mulf %46, %45 : vector<1x3xf32>
    %48 = arith.addf %43, %47 : vector<1x3xf32>
    %49 = vector.extract_strided_slice %1 {offsets = [2, 2], sizes = [1, 1], strides = [1, 1]} : vector<3x3xf32> to vector<1x1xf32>
    %50 = vector.extract_strided_slice %5 {offsets = [2, 0], sizes = [1, 3], strides = [1, 1]} : vector<3x3xf32> to vector<1x3xf32>
    %51 = vector.broadcast %49 : vector<1x1xf32> to vector<1x3xf32>
    %52 = arith.mulf %51, %50 : vector<1x3xf32>
    %53 = arith.addf %48, %52 : vector<1x3xf32>
    %54 = vector.extract_strided_slice %3 {offsets = [0, 0], sizes = [3, 1], strides = [1, 1]} : vector<3x3xf32> to vector<3x1xf32>
    %55 = vector.broadcast %54 : vector<3x1xf32> to vector<3x3xf32>
    %56 = vector.broadcast %21 : vector<1x3xf32> to vector<3x3xf32>
    %57 = arith.mulf %55, %56 : vector<3x3xf32>
    %58 = vector.extract_strided_slice %3 {offsets = [0, 1], sizes = [3, 1], strides = [1, 1]} : vector<3x3xf32> to vector<3x1xf32>
    %59 = vector.broadcast %58 : vector<3x1xf32> to vector<3x3xf32>
    %60 = vector.broadcast %37 : vector<1x3xf32> to vector<3x3xf32>
    %61 = arith.mulf %59, %60 : vector<3x3xf32>
    %62 = arith.addf %57, %61 : vector<3x3xf32>
    %63 = vector.extract_strided_slice %3 {offsets = [0, 2], sizes = [3, 1], strides = [1, 1]} : vector<3x3xf32> to vector<3x1xf32>
    %64 = vector.broadcast %63 : vector<3x1xf32> to vector<3x3xf32>
    %65 = vector.broadcast %53 : vector<1x3xf32> to vector<3x3xf32>
    %66 = arith.mulf %64, %65 : vector<3x3xf32>
    %67 = arith.addf %62, %66 : vector<3x3xf32>
    %68 = vector.extract_strided_slice %1 {offsets = [0, 0], sizes = [3, 1], strides = [1, 1]} : vector<3x3xf32> to vector<3x1xf32>
    %69 = vector.extract_strided_slice %67 {offsets = [0, 0], sizes = [1, 1], strides = [1, 1]} : vector<3x3xf32> to vector<1x1xf32>
    %70 = vector.broadcast %69 : vector<1x1xf32> to vector<3x1xf32>
    %71 = arith.mulf %68, %70 : vector<3x1xf32>
    %72 = vector.extract_strided_slice %1 {offsets = [0, 1], sizes = [3, 1], strides = [1, 1]} : vector<3x3xf32> to vector<3x1xf32>
    %73 = vector.extract_strided_slice %67 {offsets = [0, 1], sizes = [1, 1], strides = [1, 1]} : vector<3x3xf32> to vector<1x1xf32>
    %74 = vector.broadcast %73 : vector<1x1xf32> to vector<3x1xf32>
    %75 = arith.mulf %72, %74 : vector<3x1xf32>
    %76 = arith.addf %71, %75 : vector<3x1xf32>
    %77 = vector.extract_strided_slice %1 {offsets = [0, 2], sizes = [3, 1], strides = [1, 1]} : vector<3x3xf32> to vector<3x1xf32>
    %78 = vector.extract_strided_slice %67 {offsets = [0, 2], sizes = [1, 1], strides = [1, 1]} : vector<3x3xf32> to vector<1x1xf32>
    %79 = vector.broadcast %78 : vector<1x1xf32> to vector<3x1xf32>
    %80 = arith.mulf %77, %79 : vector<3x1xf32>
    %81 = arith.addf %76, %80 : vector<3x1xf32>
    %82 = vector.extract_strided_slice %67 {offsets = [0, 0], sizes = [1, 3], strides = [1, 1]} : vector<3x3xf32> to vector<1x3xf32>
    %83 = vector.broadcast %81 : vector<3x1xf32> to vector<3x3xf32>
    %84 = vector.broadcast %82 : vector<1x3xf32> to vector<3x3xf32>
    %85 = arith.mulf %83, %84 : vector<3x3xf32>
    %86 = vector.extract_strided_slice %1 {offsets = [0, 0], sizes = [3, 1], strides = [1, 1]} : vector<3x3xf32> to vector<3x1xf32>
    %87 = vector.extract_strided_slice %67 {offsets = [1, 0], sizes = [1, 1], strides = [1, 1]} : vector<3x3xf32> to vector<1x1xf32>
    %88 = vector.broadcast %87 : vector<1x1xf32> to vector<3x1xf32>
    %89 = arith.mulf %86, %88 : vector<3x1xf32>
    %90 = vector.extract_strided_slice %1 {offsets = [0, 1], sizes = [3, 1], strides = [1, 1]} : vector<3x3xf32> to vector<3x1xf32>
    %91 = vector.extract_strided_slice %67 {offsets = [1, 1], sizes = [1, 1], strides = [1, 1]} : vector<3x3xf32> to vector<1x1xf32>
    %92 = vector.broadcast %91 : vector<1x1xf32> to vector<3x1xf32>
    %93 = arith.mulf %90, %92 : vector<3x1xf32>
    %94 = arith.addf %89, %93 : vector<3x1xf32>
    %95 = vector.extract_strided_slice %1 {offsets = [0, 2], sizes = [3, 1], strides = [1, 1]} : vector<3x3xf32> to vector<3x1xf32>
    %96 = vector.extract_strided_slice %67 {offsets = [1, 2], sizes = [1, 1], strides = [1, 1]} : vector<3x3xf32> to vector<1x1xf32>
    %97 = vector.broadcast %96 : vector<1x1xf32> to vector<3x1xf32>
    %98 = arith.mulf %95, %97 : vector<3x1xf32>
    %99 = arith.addf %94, %98 : vector<3x1xf32>
    %100 = vector.extract_strided_slice %67 {offsets = [1, 0], sizes = [1, 3], strides = [1, 1]} : vector<3x3xf32> to vector<1x3xf32>
    %101 = vector.broadcast %99 : vector<3x1xf32> to vector<3x3xf32>
    %102 = vector.broadcast %100 : vector<1x3xf32> to vector<3x3xf32>
    %103 = arith.mulf %101, %102 : vector<3x3xf32>
    %104 = arith.addf %85, %103 : vector<3x3xf32>
    %105 = vector.extract_strided_slice %1 {offsets = [0, 0], sizes = [3, 1], strides = [1, 1]} : vector<3x3xf32> to vector<3x1xf32>
    %106 = vector.extract_strided_slice %67 {offsets = [2, 0], sizes = [1, 1], strides = [1, 1]} : vector<3x3xf32> to vector<1x1xf32>
    %107 = vector.broadcast %106 : vector<1x1xf32> to vector<3x1xf32>
    %108 = arith.mulf %105, %107 : vector<3x1xf32>
    %109 = vector.extract_strided_slice %1 {offsets = [0, 1], sizes = [3, 1], strides = [1, 1]} : vector<3x3xf32> to vector<3x1xf32>
    %110 = vector.extract_strided_slice %67 {offsets = [2, 1], sizes = [1, 1], strides = [1, 1]} : vector<3x3xf32> to vector<1x1xf32>
    %111 = vector.broadcast %110 : vector<1x1xf32> to vector<3x1xf32>
    %112 = arith.mulf %109, %111 : vector<3x1xf32>
    %113 = arith.addf %108, %112 : vector<3x1xf32>
    %114 = vector.extract_strided_slice %1 {offsets = [0, 2], sizes = [3, 1], strides = [1, 1]} : vector<3x3xf32> to vector<3x1xf32>
    %115 = vector.extract_strided_slice %67 {offsets = [2, 2], sizes = [1, 1], strides = [1, 1]} : vector<3x3xf32> to vector<1x1xf32>
    %116 = vector.broadcast %115 : vector<1x1xf32> to vector<3x1xf32>
    %117 = arith.mulf %114, %116 : vector<3x1xf32>
    %118 = arith.addf %113, %117 : vector<3x1xf32>
    %119 = vector.extract_strided_slice %67 {offsets = [2, 0], sizes = [1, 3], strides = [1, 1]} : vector<3x3xf32> to vector<1x3xf32>
    %120 = vector.broadcast %118 : vector<3x1xf32> to vector<3x3xf32>
    %121 = vector.broadcast %119 : vector<1x3xf32> to vector<3x3xf32>
    %122 = arith.mulf %120, %121 : vector<3x3xf32>
    %123 = arith.addf %104, %122 : vector<3x3xf32>
    %c0_6 = arith.constant 0 : index
    %c0_7 = arith.constant 0 : index
    %124 = vector.load %arg1[%c0_6, %c0_7] : memref<3x3xf32, #tpu.memory_space<vmem>>, vector<3x3xf32>
    tpu.vector_store %arg1[%c0_6, %c0_7], %123 {strides = array<i32>} : memref<3x3xf32, #tpu.memory_space<vmem>>, vector<3x3xf32>,
    return
  }
}

</mosaic_0001>

<bundles_post_ra>
// kernel: model_forward.1
= control target key start
LH: loop header
LB: loop body
LE: loop exit
PB: predicated region body
PF: predicated region fallthrough
CT: control target
= control target key end

     0   :  { %v200_v1 = vmov 2   ;;  %v201_v2 = vmov 1   ;;  %s239_s0 = inlined_call_operand.vmem [shape: f32[3,3,3], index: 0, kind: input, shape index: {}]   ;;  %s240_s1 = inlined_call_operand.hbm [shape: f32[3,3], index: 1, kind: output, shape index: {}]  }
   0x1   :  { %v219_v0 = vld [vmem:[%s239_s0] sm:$0x7]  ;;  %172 = vset.pattern.permute.xlu1 %v200_v1  ;;  %170 = vset.pattern.permute.xlu0 %v201_v2 }
   0x2   :  { %6 = vsyncpa [#allocation3], 0  ;;  %42 = vperm.xlu1 %172, %v219_v0   ;;  %29 = vperm.xlu0 %170, %v219_v0   ;;  %v162_v3 = vld [vmem:[%s239_s0 + $0x4] sm:$0x7]  ;;  %v202_v4 = vmov 0   ;;  %v59_v8 = vlaneseq  ;;  %s204_s12 = smov 127  }
   0x3   :  { %v163_v5 = vld [vmem:[%s239_s0 + $0x8] sm:$0x7]  ;;  %s203_s0 = smov 126   ;;  %s205_s13 = smov [#allocation2]   ;;  %vm146_vm0 = vcmask 18432  }
   0x4   :  { %v60_v14 = vshrl.u32 %v59_v8, 7  ;;  %s154_s14 = sshll.u32 %s205_s13, 4  ;;  %s155_s14 = int_to_ptr.vmem [resolvable:$true] %s154_s14 }
   0x5   :  { %s178_s15 = scalar_lea.vmem %s155_s14, 64  ;;  %p183_p1 = scmp.lt.s32.totalorder %s155_s14, %s155_s14 }
   0x6   :  { %171 = vset.pattern.permute.xlu0 %v202_v4  ;;  %173 = vset.pattern.permute.xlu1 %v202_v4  ;;  %v70_v25 = vsub.s32 1, %v60_v14  ;;  %v61_v26 = vsub.s32 0, %v60_v14  ;;  %v80_v31 = vsub.s32 2, %v60_v14  ;;  %p179_p0 = scmp.ne.s32.totalorder %s155_s14, %s178_s15  ;;  %p184_p2 = scmp.lt.s32.totalorder %s178_s15, %s178_s15 }
   0x7   :  { %16 = vperm.xlu0 %171, %v219_v0   ;;  %56 = vperm.xlu1 %173, %v162_v3  }
   0x8   :  { %p185_p3 = por %p184_p2, %p183_p1 }
   0xa   :  { %p186_p4 = pnand %p185_p3, %p179_p0 }
   0xb   :  { %174 = vset.pattern.permute.xlu1 %v201_v2  ;;  %175 = vset.pattern.permute.xlu0 %v200_v1 }
   0xc   :  { %65 = vperm.xlu1 %174, %v162_v3   ;;  %75 = vperm.xlu0 %175, %v162_v3  }
  0x10   :  { %176 = vset.pattern.permute.xlu0 %v202_v4  ;;  %177 = vset.pattern.permute.xlu1 %v202_v4 }
  0x7d   :  { %v43_v6 = vpop.permute.xlu1 %42  ;;  %v30_v7 = vpop.permute.xlu0 %29 }
  0x7e   :  { %v45_v9 = vmul.f32 %v163_v5, %v43_v6  ;;  %v32_v10 = vmul.f32 %v163_v5, %v30_v7 }
  0x80   :  { %v47_v11 = vrot.slane %v45_v9, 6  ;;  %v50_v12 = vrot.slane %v45_v9, 7  ;;  %v34_v13 = vrot.slane %v32_v10, 7  ;;  %v38_v20 = vrot.slane %v32_v10, 1 }
  0x82   :  { %v49_v15 = vadd.f32 %v47_v11, %v219_v0  ;;  %v36_v16 = vadd.f32 %v34_v13, %v219_v0  ;;  %v17_v17 = vpop.permute.xlu0 %16  ;;  %v57_v21 = vpop.permute.xlu1 %56 }
  0x83   :  { %v19_v18 = vmul.f32 %v163_v5, %v17_v17 }
  0x84   :  { %v37_v19 = vadd.f32 %v36_v16, %v32_v10  ;;  %v52_v22 = vadd.f32 %v50_v12, %v49_v15 }
  0x85   :  { %v20_v23 = vadd.f32 %v19_v18, %v219_v0  ;;  %v22_v24 = vrot.slane %v19_v18, 1  ;;  %v25_v28 = vrot.slane %v19_v18, 2 }
  0x86   :  { %v40_v27 = vadd.f32 %v38_v20, %v37_v19  ;;  %v53_v30 = vadd.f32 %v52_v22, %v45_v9 }
  0x87   :  { %v24_v29 = vadd.f32 %v22_v24, %v20_v23  ;;  %v66_v34 = vpop.permute.xlu1 %65  ;;  %v76_v37 = vpop.permute.xlu0 %75 }
  0x88   :  { %v71_v33 = vrot.slane %v40_v27, %v70_v25  ;;  %v81_v36 = vrot.slane %v53_v30, %v80_v31 }
  0x89   :  { %v27_v32 = vadd.f32 %v25_v28, %v24_v29 }
  0x8a   :  { %v72_v39 = vmul.f32 %v71_v33, %v66_v34  ;;  %v82_v41 = vmul.f32 %v81_v36, %v76_v37 }
  0x8b   :  { %v62_v35 = vrot.slane %v27_v32, %v61_v26 }
  0x8d   :  { %v63_v38 = vmul.f32 %v62_v35, %v57_v21 }
  0x8f   :  { %v73_v40 = vadd.f32 %v72_v39, %v63_v38 }
  0x91   :  { %v83_v42 = vadd.f32 %v82_v41, %v73_v40 }
  0x93   :  { %v87_v43 = vrot.slane %v83_v42, %v61_v26  ;;  %v128_v45 = vrot.slane %v83_v42, %v80_v31  ;;  %v107_v46 = vrot.slane %v83_v42, %v70_v25 }
  0x95   :  { %v88_v44 = vmul.f32 %v87_v43, %v219_v0  ;;  %v129_v47 = vmul.f32 %v128_v45, %v219_v0  ;;  %v108_v48 = vmul.f32 %v107_v46, %v219_v0 }
  0x97   :  { %94 = vrot.lane.b32.xlu0 %v88_v44, %s203_s0  ;;  %90 = vrot.lane.b32.xlu1 %v88_v44, %s204_s12 }
  0x9b   :  { %131 = vrot.lane.b32.xlu0 %v129_v47, %s204_s12  ;;  %110 = vrot.lane.b32.xlu1 %v108_v48, %s204_s12 }
  0x9f   :  { %114 = vrot.lane.b32.xlu1 %v108_v48, %s203_s0 }
  0xa3   :  { %135 = vrot.lane.b32.xlu1 %v129_v47, %s203_s0 }
 0x109   :  { %v91_v49 = vpop.permute.xlu1 %90  ;;  %v95_v51 = vpop.permute.xlu0 %94 }
 0x10a   :  { %v93_v50 = vadd.f32 %v91_v49, %v88_v44 }
 0x10c   :  { %v97_v52 = vadd.f32 %v95_v51, %v93_v50 }
 0x10d   :  { %v111_v53 = vpop.permute.xlu1 %110  ;;  %v132_v55 = vpop.permute.xlu0 %131 }
 0x10e   :  { %100 = vperm.xlu0 %176, %v97_v52   ;;  %v113_v54 = vadd.f32 %v111_v53, %v108_v48  ;;  %v134_v58 = vadd.f32 %v132_v55, %v129_v47 }
 0x111   :  { %v115_v56 = vpop.permute.xlu1 %114 }
 0x112   :  { %v117_v57 = vadd.f32 %v115_v56, %v113_v54 }
 0x114   :  { %120 = vperm.xlu1 %177, %v117_v57  }
 0x115   :  { %v136_v59 = vpop.permute.xlu1 %135 }
 0x116   :  { %v138_v60 = vadd.f32 %v136_v59, %v134_v58 }
 0x118   :  { %141 = vperm.xlu1 %177, %v138_v60  }
 0x189   :  { %v101_v61 = vpop.permute.xlu0 %100 }
 0x18a   :  { %v103_v0 = vmul.f32 %v101_v61, %v87_v43 }
 0x18f   :  { %v121_v62 = vpop.permute.xlu1 %120 }
 0x190   :  { %v123_v63 = vmul.f32 %v121_v62, %v107_v46 }
 0x192   :  { %v124_v2 = vadd.f32 %v123_v63, %v103_v0 }
 0x193   :  { %v142_v1 = vpop.permute.xlu1 %141 }
 0x194   :  { %v144_v3 = vmul.f32 %v142_v1, %v128_v45 }
 0x196   :  { %v145_v4 = vadd.f32 %v144_v3, %v124_v2 }
 0x198   :  { %147 = vst.msk [vmem:[#allocation2] sm:$0x7] %vm146_vm0, %v145_v4 }
 0x199   :  { %189 = shalt.err (!%p186_p4)
}
 0x19a   :  { %157 = dma.vmem_to_hbm [thread:$0]  %s155_s14, 64, %s240_s1, [#allocation3]  }
 0x19b   :  { %198 = dma.done.wait [#allocation3], 64  }
 0x19c   :  { %199 = vsyncadd [#allocation3], 4294967232 }
 0x19d   :  { %161 = vsyncpa [#allocation3], 1 }

</bundles_post_ra>
